<compile_context>
chip_gen: v6e
topology: v6e:2x2x1
jax: 0.10.0
libtpu: 0.0.40
codegen_flags: <defaults>
</compile_context>

<pallas_src>
import jax
import jax.numpy as jnp
from jax.experimental import pallas as pl
from jax.experimental.pallas import tpu as pltpu


# ----------------------------- model dims -----------------------------------
BATCH = 4
CHANNELS = 3
SPATIAL = 16
FLAT = CHANNELS * SPATIAL * SPATIAL          # 768  (num_flat_features)
NUM_FEATURES = 256                           # stands in for 4096
HIDDEN = 256                                 # stands in for 4096
EMBED_DIM = 128                              # stands in for num_embedding_dimensions
BN_EPS = 1e-5
PRELU_INIT = 0.3

BF16_ROW_TILE = 16                           # bf16 packs 16 rows per sublane group
ROWS = 3 * BATCH                             # anchor|positive|negative stacked on M
ROWS_PAD = ((ROWS + BF16_ROW_TILE - 1) // BF16_ROW_TILE) * BF16_ROW_TILE


# ------------------------------- kernel -------------------------------------
def facenet_kernel(
    x_ref,                 # (ROWS_PAD, FLAT)        bf16   all three branches
    wfe_ref, bfe_ref,      # (FLAT, F) bf16, (1, F) f32     feature-extractor stand-in
    w1_ref, b1_ref,        # (F, H)   bf16, (1, H) f32      Linear1 with BN1 folded in
    w2_ref, b2_ref,        # (H, H)   bf16, (1, H) f32      Linear2 with BN2 folded in
    w3_ref, b3_ref,        # (H, E)   bf16, (1, E) f32      Linear3
    alpha_ref,             # (2,)     f32  in SMEM          PReLU alphas (layer1, layer2)
    o_ref,                 # (ROWS_PAD, E) f32
):
    # TODO(synk): pretrained DenseNet backbone has no in-script equivalent
    # (no checkpoint available); a single Linear stands in as the feature
    # extractor, followed by the flatten that forward_single performs.
    x = x_ref[...]                                                     # bf16
    feat = jnp.dot(x, wfe_ref[...],
                   preferred_element_type=jnp.float32) + bfe_ref[...]  # f32 (R, F)

    # Linear(F, H) + BatchNorm1d(H) [folded] + PReLU(1, init=0.3)
    a1 = alpha_ref[0]
    h = jnp.dot(feat.astype(jnp.bfloat16), w1_ref[...],
                preferred_element_type=jnp.float32) + b1_ref[...]
    h = jnp.where(h > 0.0, h, h * a1)

    # Linear(H, H) + BatchNorm1d(H) [folded] + PReLU(1, init=0.3)
    a2 = alpha_ref[1]
    h = jnp.dot(h.astype(jnp.bfloat16), w2_ref[...],
                preferred_element_type=jnp.float32) + b2_ref[...]
    h = jnp.where(h > 0.0, h, h * a2)

    # Linear(H, E) + Sigmoid (EUP; not on the critical path at these sizes)
    h = jnp.dot(h.astype(jnp.bfloat16), w3_ref[...],
                preferred_element_type=jnp.float32) + b3_ref[...]
    o_ref[...] = jax.nn.sigmoid(h)


# ------------------------------ wrapper --------------------------------------
_VMEM_SPEC = pl.BlockSpec(memory_space=pltpu.MemorySpace.VMEM)
_SMEM_SPEC = pl.BlockSpec(memory_space=pltpu.MemorySpace.SMEM)


@jax.jit
def facenet_forward(anchor, positive, negative, params):
    """anchor/positive/negative: (B, C, H, W) NCHW -> three (B, EMBED_DIM) embeddings.

    B is free: stack more triplets along the batch axis to raise effective M
    (target ~128 rows on v5e / ~256 on v6e+v7x for full MXU row occupancy).
    """
    b = anchor.shape[0]
    rows = 3 * b
    rows_pad = ((rows + BF16_ROW_TILE - 1) // BF16_ROW_TILE) * BF16_ROW_TILE

    # One fused expression: stack the three branches on M, flatten NCHW
    # row-major (== torch .view(-1, num_flat_features(x))), cast to bf16 MXU
    # operands and pad to a full bf16 row tile.  XLA emits this as a single
    # copy in front of the kernel.
    x = jnp.stack([anchor, positive, negative], axis=0).reshape(rows, -1)
    x = jnp.pad(x.astype(jnp.bfloat16), ((0, rows_pad - rows), (0, 0)))   # (ROWS_PAD, FLAT)

    weights_and_biases = [
        params["wfe"], params["bfe"],
        params["w1"], params["b1"],
        params["w2"], params["b2"],
        params["w3"], params["b3"],
    ]
    alphas = params["alphas"]                                  # (2,) f32

    in_specs = [_VMEM_SPEC] * (1 + len(weights_and_biases)) + [_SMEM_SPEC]

    out = pl.pallas_call(
        facenet_kernel,
        out_shape=jax.ShapeDtypeStruct((rows_pad, EMBED_DIM), jnp.float32),
        in_specs=in_specs,
        out_specs=_VMEM_SPEC,
        # Gridless single shot: all weights fit comfortably in VMEM at these
        # toy sizes (< 1 MiB total), so no vmem_limit_bytes needed.  See the
        # NOTE at the top of the file for the real-size tiling / streaming /
        # two-TensorCore plan.
    )(x, *weights_and_biases, alphas)

    emb_a = out[0:b]
    emb_p = out[b:2 * b]
    emb_n = out[2 * b:3 * b]
    return emb_a, emb_p, emb_n


# -------------------------- deterministic params -----------------------------
def init_params(key):
    ks = jax.random.split(key, 16)

    def lin(kw, fan_in, fan_out):
        scale = 1.0 / jnp.sqrt(jnp.float32(fan_in))
        w = jax.random.uniform(kw, (fan_in, fan_out), jnp.float32, -scale, scale)
        b = jnp.full((1, fan_out), 0.01, jnp.float32)
        return w, b

    def bn_affine(kg, kb, km, kv, n):
        # eval-mode BatchNorm1d: y = x * s + t with deterministic non-trivial
        # gamma/beta/running stats.
        gamma = 1.0 + 0.1 * jax.random.normal(kg, (1, n), jnp.float32)
        beta = 0.1 * jax.random.normal(kb, (1, n), jnp.float32)
        mean = 0.05 * jax.random.normal(km, (1, n), jnp.float32)
        var = 1.0 + 0.1 * jax.random.uniform(kv, (1, n), jnp.float32)
        s = gamma / jnp.sqrt(var + BN_EPS)
        t = beta - mean * s
        return s, t

    wfe, bfe = lin(ks[0], FLAT, NUM_FEATURES)
    w1, b1 = lin(ks[1], NUM_FEATURES, HIDDEN)
    s1, t1 = bn_affine(ks[2], ks[3], ks[4], ks[5], HIDDEN)
    w2, b2 = lin(ks[6], HIDDEN, HIDDEN)          # Linear(num_features, 4096), F == H here
    s2, t2 = bn_affine(ks[7], ks[8], ks[9], ks[10], HIDDEN)
    w3, b3 = lin(ks[11], HIDDEN, EMBED_DIM)

    # Fold eval-mode BN into the preceding Linear (exact at f32):
    #   w' = w * s ; b' = b * s + t.
    w1_f = w1 * s1
    b1_f = b1 * s1 + t1
    w2_f = w2 * s2
    b2_f = b2 * s2 + t2

    # PReLU(num_parameters=1, init=0.3) for each of the two PReLU modules.
    alphas = jnp.array([PRELU_INIT, PRELU_INIT], jnp.float32)

    return dict(
        # bf16 matmul operands, f32 biases / scalars
        wfe=wfe.astype(jnp.bfloat16), bfe=bfe,
        w1=w1_f.astype(jnp.bfloat16), b1=b1_f,
        w2=w2_f.astype(jnp.bfloat16), b2=b2_f,
        w3=w3.astype(jnp.bfloat16), b3=b3,
        alphas=alphas,
    )


# --------------------------- pure-JAX reference -------------------------------
def reference_forward(anchor, positive, negative, params):
    """Mirrors the kernel's bf16 operand quantization with f32 accumulation."""
    def q(v):  # bf16 operand quantization, math in f32
        return v.astype(jnp.bfloat16).astype(jnp.float32)

    def single(x):
        x = x.reshape(x.shape[0], -1)
        feat = q(x) @ params["wfe"].astype(jnp.float32) + params["bfe"]
        h = q(feat) @ params["w1"].astype(jnp.float32) + params["b1"]
        h = jnp.where(h > 0.0, h, h * params["alphas"][0])
        h = q(h) @ params["w2"].astype(jnp.float32) + params["b2"]
        h = jnp.where(h > 0.0, h, h * params["alphas"][1])
        h = q(h) @ params["w3"].astype(jnp.float32) + params["b3"]
        return jax.nn.sigmoid(h)

    return single(anchor), single(positive), single(negative)


# --------------------------------- main ---------------------------------------
if __name__ == "__main__":
    key = jax.random.PRNGKey(0)
    k_a, k_p, k_n, k_w = jax.random.split(key, 4)

    anchor = jax.random.normal(k_a, (BATCH, CHANNELS, SPATIAL, SPATIAL), jnp.float32)
    positive = jax.random.normal(k_p, (BATCH, CHANNELS, SPATIAL, SPATIAL), jnp.float32)
    negative = jax.random.normal(k_n, (BATCH, CHANNELS, SPATIAL, SPATIAL), jnp.float32)

    params = init_params(k_w)

    emb_a, emb_p, emb_n = facenet_forward(anchor, positive, negative, params)
    jax.block_until_ready((emb_a, emb_p, emb_n))

    assert emb_a.shape == (BATCH, EMBED_DIM)
    assert emb_p.shape == (BATCH, EMBED_DIM)
    assert emb_n.shape == (BATCH, EMBED_DIM)
    for e in (emb_a, emb_p, emb_n):
        assert bool(jnp.all(jnp.isfinite(e)))
        assert bool(jnp.all((e > 0.0) & (e < 1.0)))   # sigmoid range

    # Numerical check vs. a reference with identical bf16 operand quantization
    # (only MXU accumulation-order differences remain -> tight tolerance).
    ref_a, ref_p, ref_n = reference_forward(anchor, positive, negative, params)
    for got, ref in ((emb_a, ref_a), (emb_p, ref_p), (emb_n, ref_n)):
        assert bool(jnp.max(jnp.abs(got - ref)) < 1e-2)

    print("KERNEL_OK")
</pallas_src>

<mosaic_0001>
module attributes {stable_mosaic.version = 11 : i64} {
  func.func @facenet_kernel(%arg0: memref<16x768xbf16, #tpu.memory_space<vmem>>, %arg1: memref<768x256xbf16, #tpu.memory_space<vmem>>, %arg2: memref<1x256xf32, #tpu.memory_space<vmem>>, %arg3: memref<256x256xbf16, #tpu.memory_space<vmem>>, %arg4: memref<1x256xf32, #tpu.memory_space<vmem>>, %arg5: memref<256x256xbf16, #tpu.memory_space<vmem>>, %arg6: memref<1x256xf32, #tpu.memory_space<vmem>>, %arg7: memref<256x128xbf16, #tpu.memory_space<vmem>>, %arg8: memref<1x128xf32, #tpu.memory_space<vmem>>, %arg9: memref<2xf32, #tpu.memory_space<smem>>, %arg10: memref<16x128xf32, #tpu.memory_space<vmem>>) attributes {dimension_semantics = [], scalar_prefetch = 0 : i64, scratch_operands = 0 : i64, tpu.core_type = #tpu.core_type<tc>} {
    %c0 = arith.constant 0 : index
    %c0_0 = arith.constant 0 : index
    %0 = vector.load %arg0[%c0, %c0_0] : memref<16x768xbf16, #tpu.memory_space<vmem>>, vector<16x768xbf16>
    %c0_1 = arith.constant 0 : index
    %c0_2 = arith.constant 0 : index
    %1 = vector.load %arg1[%c0_1, %c0_2] : memref<768x256xbf16, #tpu.memory_space<vmem>>, vector<768x256xbf16>
    %cst = arith.constant dense<0.000000e+00> : vector<16x256xf32>
    %2 = tpu.matmul %0, %1, %cst {dimension_numbers = #tpu.dot_dimension_numbers<[1], [0], [0], [1], [0, 0, 1, 1], [], []>} : vector<16x768xbf16>, vector<768x256xbf16>, vector<16x256xf32> -> vector<16x256xf32>
    %c0_3 = arith.constant 0 : index
    %c0_4 = arith.constant 0 : index
    %3 = vector.load %arg2[%c0_3, %c0_4] : memref<1x256xf32, #tpu.memory_space<vmem>>, vector<1x256xf32>
    %4 = vector.broadcast %3 : vector<1x256xf32> to vector<16x256xf32>
    %5 = arith.addf %2, %4 : vector<16x256xf32>
    %c0_5 = arith.constant 0 : index
    %6 = memref.load %arg9[%c0_5] : memref<2xf32, #tpu.memory_space<smem>>
    %7 = arith.truncf %5 : vector<16x256xf32> to vector<16x256xbf16>
    %c0_6 = arith.constant 0 : index
    %c0_7 = arith.constant 0 : index
    %8 = vector.load %arg3[%c0_6, %c0_7] : memref<256x256xbf16, #tpu.memory_space<vmem>>, vector<256x256xbf16>
    %cst_8 = arith.constant dense<0.000000e+00> : vector<16x256xf32>
    %9 = tpu.matmul %7, %8, %cst_8 {dimension_numbers = #tpu.dot_dimension_numbers<[1], [0], [0], [1], [0, 0, 1, 1], [], []>} : vector<16x256xbf16>, vector<256x256xbf16>, vector<16x256xf32> -> vector<16x256xf32>
    %c0_9 = arith.constant 0 : index
    %c0_10 = arith.constant 0 : index
    %10 = vector.load %arg4[%c0_9, %c0_10] : memref<1x256xf32, #tpu.memory_space<vmem>>, vector<1x256xf32>
    %11 = vector.broadcast %10 : vector<1x256xf32> to vector<16x256xf32>
    %12 = arith.addf %9, %11 : vector<16x256xf32>
    %cst_11 = arith.constant 0.000000e+00 : f32
    %13 = vector.broadcast %cst_11 : f32 to vector<16x256xf32>
    %14 = arith.cmpf ogt, %12, %13 : vector<16x256xf32>
    %15 = vector.broadcast %6 : f32 to vector<16x256xf32>
    %16 = arith.mulf %12, %15 : vector<16x256xf32>
    %17 = arith.select %14, %12, %16 : vector<16x256xi1>, vector<16x256xf32>
    %c1 = arith.constant 1 : index
    %18 = memref.load %arg9[%c1] : memref<2xf32, #tpu.memory_space<smem>>
    %19 = arith.truncf %17 : vector<16x256xf32> to vector<16x256xbf16>
    %c0_12 = arith.constant 0 : index
    %c0_13 = arith.constant 0 : index
    %20 = vector.load %arg5[%c0_12, %c0_13] : memref<256x256xbf16, #tpu.memory_space<vmem>>, vector<256x256xbf16>
    %cst_14 = arith.constant dense<0.000000e+00> : vector<16x256xf32>
    %21 = tpu.matmul %19, %20, %cst_14 {dimension_numbers = #tpu.dot_dimension_numbers<[1], [0], [0], [1], [0, 0, 1, 1], [], []>} : vector<16x256xbf16>, vector<256x256xbf16>, vector<16x256xf32> -> vector<16x256xf32>
    %c0_15 = arith.constant 0 : index
    %c0_16 = arith.constant 0 : index
    %22 = vector.load %arg6[%c0_15, %c0_16] : memref<1x256xf32, #tpu.memory_space<vmem>>, vector<1x256xf32>
    %23 = vector.broadcast %22 : vector<1x256xf32> to vector<16x256xf32>
    %24 = arith.addf %21, %23 : vector<16x256xf32>
    %cst_17 = arith.constant 0.000000e+00 : f32
    %25 = vector.broadcast %cst_17 : f32 to vector<16x256xf32>
    %26 = arith.cmpf ogt, %24, %25 : vector<16x256xf32>
    %27 = vector.broadcast %18 : f32 to vector<16x256xf32>
    %28 = arith.mulf %24, %27 : vector<16x256xf32>
    %29 = arith.select %26, %24, %28 : vector<16x256xi1>, vector<16x256xf32>
    %30 = arith.truncf %29 : vector<16x256xf32> to vector<16x256xbf16>
    %c0_18 = arith.constant 0 : index
    %c0_19 = arith.constant 0 : index
    %31 = vector.load %arg7[%c0_18, %c0_19] : memref<256x128xbf16, #tpu.memory_space<vmem>>, vector<256x128xbf16>
    %cst_20 = arith.constant dense<0.000000e+00> : vector<16x128xf32>
    %32 = tpu.matmul %30, %31, %cst_20 {dimension_numbers = #tpu.dot_dimension_numbers<[1], [0], [0], [1], [0, 0, 1, 1], [], []>} : vector<16x256xbf16>, vector<256x128xbf16>, vector<16x128xf32> -> vector<16x128xf32>
    %c0_21 = arith.constant 0 : index
    %c0_22 = arith.constant 0 : index
    %33 = vector.load %arg8[%c0_21, %c0_22] : memref<1x128xf32, #tpu.memory_space<vmem>>, vector<1x128xf32>
    %34 = vector.broadcast %33 : vector<1x128xf32> to vector<16x128xf32>
    %35 = arith.addf %32, %34 : vector<16x128xf32>
    %36 = arith.negf %35 : vector<16x128xf32>
    %37 = math.exp %36 : vector<16x128xf32>
    %cst_23 = arith.constant 1.000000e+00 : f32
    %38 = vector.broadcast %cst_23 : f32 to vector<16x128xf32>
    %39 = arith.addf %38, %37 : vector<16x128xf32>
    %40 = arith.divf %38, %39 : vector<16x128xf32>
    %c0_24 = arith.constant 0 : index
    %c0_25 = arith.constant 0 : index
    %41 = vector.load %arg10[%c0_24, %c0_25] : memref<16x128xf32, #tpu.memory_space<vmem>>, vector<16x128xf32>
    tpu.vector_store %arg10[%c0_24, %c0_25], %40 {strides = array<i32>} : memref<16x128xf32, #tpu.memory_space<vmem>>, vector<16x128xf32>,
    return
  }
}

</mosaic_0001>

<bundles_post_ra>
// kernel: facenet_forward.1
= control target key start
LH: loop header
LB: loop body
LE: loop exit
PB: predicated region body
PF: predicated region fallthrough
CT: control target
= control target key end

     0   :  { %15 = vsyncpa [#allocation3], 0  ;;  %s2654_s0 = inlined_call_operand.vmem [shape: bf16[16,768], index: 0, kind: input, shape index: {}]   ;;  %s2655_s1 = inlined_call_operand.vmem [shape: bf16[768,256], index: 1, kind: input, shape index: {}]   ;;  %s2656_s2 = inlined_call_operand.vmem [shape: f32[1,256], index: 2, kind: input, shape index: {}]   ;;  %s2657_s3 = inlined_call_operand.vmem [shape: bf16[256,256], index: 3, kind: input, shape index: {}]   ;;  %s2658_s4 = inlined_call_operand.vmem [shape: f32[1,256], index: 4, kind: input, shape index: {}]   ;;  %s2659_s5 = inlined_call_operand.vmem [shape: bf16[256,256], index: 5, kind: input, shape index: {}]   ;;  %s2660_s6 = inlined_call_operand.vmem [shape: f32[1,256], index: 6, kind: input, shape index: {}]   ;;  %s2661_s7 = inlined_call_operand.vmem [shape: bf16[256,128], index: 7, kind: input, shape index: {}]   ;;  %s2662_s8 = inlined_call_operand.vmem [shape: f32[1,128], index: 8, kind: input, shape index: {}]   ;;  %s2663_s9 = inlined_call_operand.vmem [shape: f32[2], index: 9, kind: input, shape index: {}]   ;;  %s2664_s10 = inlined_call_operand.vmem [shape: f32[16,128], index: 10, kind: output, shape index: {}]  }
   0x1   :  { %s40_s15 = sshll.u32 %s2663_s9, 4  ;;  %s41_s15 = int_to_ptr.vmem [resolvable:$true] %s40_s15 }
   0x2   :  { %s2007_s16 = scalar_lea.vmem %s41_s15, 16  ;;  %p2012_p1 = scmp.lt.s32.totalorder %s41_s15, %s41_s15 }
   0x3   :  { %p2008_p0 = scmp.ne.s32.totalorder %s41_s15, %s2007_s16  ;;  %p2013_p2 = scmp.lt.s32.totalorder %s2007_s16, %s2007_s16 }
   0x5   :  { %p2014_p3 = por %p2013_p2, %p2012_p1 }
   0x7   :  { %p2015_p4 = pnand %p2014_p3, %p2008_p0 }
   0x9   :  { %2018 = shalt.err (!%p2015_p4)
}
   0xa   :  { %s2021_s17 = smov [#allocation2]  }
   0xb   :  { %43 = dma.vmem_to_smem %s41_s15, 16, %s2021_s17, [#allocation3]  }
   0xc   :  { %2019 = dma.done.wait [#allocation3], 16  }
   0xd   :  { %2020 = vsyncadd [#allocation3], 4294967280 }
   0xe   :  { %47 = sfence }
   0xf   :  { %v1734_v0 = vld [vmem:[%s2655_s1 + $0x74] ss:$8 sps:$4 sm:$0xff]   ;;  %v1736_v1 = vld [vmem:[%s2655_s1 + $0x70] ss:$8 sps:$4 sm:$0xff]   ;;  %v1740_v4 = vld [vmem:[%s2655_s1 + $0x64] ss:$8 sps:$4 sm:$0xff]  }
  0x10   :  { %673 = vmatprep.subr.bf16.mxu0 %v1734_v0  ;;  %v1737_v2 = vld [vmem:[%s2655_s1 + $0x174] ss:$8 sps:$4 sm:$0xff]   ;;  %v1739_v3 = vld [vmem:[%s2655_s1 + $0x170] ss:$8 sps:$4 sm:$0xff]   ;;  %v1742_v5 = vld [vmem:[%s2655_s1 + $0x60] ss:$8 sps:$4 sm:$0xff]  }
  0x11   :  { %674 = vmatpush1.bf16.msra.mxu0 %v1736_v1  ;;  %716 = vmatprep.subr.bf16.mxu1 %v1737_v2  ;;  %v1743_v6 = vld [vmem:[%s2655_s1 + $0x164] ss:$8 sps:$4 sm:$0xff]   ;;  %v1745_v7 = vld [vmem:[%s2655_s1 + $0x160] ss:$8 sps:$4 sm:$0xff]   ;;  %v1746_v8 = vld [vmem:[%s2655_s1 + $0x54] ss:$8 sps:$4 sm:$0xff]  }
  0x12   :  { %717 = vmatpush1.bf16.msra.mxu1 %v1739_v3  ;;  %675 = vmatprep.subr.bf16.mxu0 %v1740_v4  ;;  %v1748_v9 = vld [vmem:[%s2655_s1 + $0x50] ss:$8 sps:$4 sm:$0xff]   ;;  %v1749_v10 = vld [vmem:[%s2655_s1 + $0x154] ss:$8 sps:$4 sm:$0xff]   ;;  %v1752_v11 = vld [vmem:[%s2655_s1 + $0x44] ss:$8 sps:$4 sm:$0xff]  }
  0x13   :  { %718 = vmatprep.subr.bf16.mxu1 %v1743_v6  ;;  %v1751_v12 = vld [vmem:[%s2655_s1 + $0x150] ss:$8 sps:$4 sm:$0xff]   ;;  %v1755_v13 = vld [vmem:[%s2655_s1 + $0x144] ss:$8 sps:$4 sm:$0xff]   ;;  %v1754_v14 = vld [vmem:[%s2655_s1 + $0x40] ss:$8 sps:$4 sm:$0xff]  }
  0x14   :  { %v1758_v15 = vld [vmem:[%s2655_s1 + $0x34] ss:$8 sps:$4 sm:$0xff]   ;;  %v1757_v16 = vld [vmem:[%s2655_s1 + $0x140] ss:$8 sps:$4 sm:$0xff]   ;;  %v1760_v18 = vld [vmem:[%s2655_s1 + $0x30] ss:$8 sps:$4 sm:$0xff]  }
  0x15   :  { %676 = vmatpush1.bf16.msra.mxu0 %v1742_v5  ;;  %v1761_v17 = vld [vmem:[%s2655_s1 + $0x134] ss:$8 sps:$4 sm:$0xff]   ;;  %v1764_v19 = vld [vmem:[%s2655_s1 + $0x24] ss:$8 sps:$4 sm:$0xff]   ;;  %v1763_v20 = vld [vmem:[%s2655_s1 + $0x130] ss:$8 sps:$4 sm:$0xff]  }
  0x16   :  { %677 = vmatprep.subr.bf16.mxu0 %v1746_v8  ;;  %719 = vmatpush1.bf16.msra.mxu1 %v1745_v7  ;;  %v1767_v21 = vld [vmem:[%s2655_s1 + $0x124] ss:$8 sps:$4 sm:$0xff]   ;;  %v1766_v22 = vld [vmem:[%s2655_s1 + $0x20] ss:$8 sps:$4 sm:$0xff]   ;;  %v1770_v23 = vld [vmem:[%s2655_s1 + $0x14] ss:$8 sps:$4 sm:$0xff]  }
  0x17   :  { %720 = vmatprep.subr.bf16.mxu1 %v1749_v10  ;;  %v1769_v24 = vld [vmem:[%s2655_s1 + $0x120] ss:$8 sps:$4 sm:$0xff]   ;;  %v1773_v25 = vld [vmem:[%s2655_s1 + $0x114] ss:$8 sps:$4 sm:$0xff]   ;;  %v1772_v26 = vld [vmem:[%s2655_s1 + $0x10] ss:$8 sps:$4 sm:$0xff]  }
  0x18   :  { %v1776_v27 = vld [vmem:[%s2655_s1 + $0x4] ss:$8 sps:$4 sm:$0xff]   ;;  %v1775_v28 = vld [vmem:[%s2655_s1 + $0x110] ss:$8 sps:$4 sm:$0xff]   ;;  %v1778_v30 = vld [vmem:[%s2655_s1] ss:$8 sps:$4 sm:$0xff]  }
  0x19   :  { %678 = vmatpush1.bf16.msra.mxu0 %v1748_v9  ;;  %v1779_v29 = vld [vmem:[%s2655_s1 + $0x104] ss:$8 sps:$4 sm:$0xff]   ;;  %v1782_v31 = vld [vmem:[%s2655_s1 + $0xf4] ss:$8 sps:$4 sm:$0xff]   ;;  %v1781_v32 = vld [vmem:[%s2655_s1 + $0x100] ss:$8 sps:$4 sm:$0xff]  }
  0x1a   :  { %679 = vmatprep.subr.bf16.mxu0 %v1752_v11  ;;  %721 = vmatpush1.bf16.msra.mxu1 %v1751_v12  ;;  %v1785_v33 = vld [vmem:[%s2655_s1 + $0x1f4] ss:$8 sps:$4 sm:$0xff]   ;;  %v1784_v34 = vld [vmem:[%s2655_s1 + $0xf0] ss:$8 sps:$4 sm:$0xff]   ;;  %v1788_v35 = vld [vmem:[%s2655_s1 + $0xe4] ss:$8 sps:$4 sm:$0xff]  }
  0x1b   :  { %722 = vmatprep.subr.bf16.mxu1 %v1755_v13  ;;  %v1787_v36 = vld [vmem:[%s2655_s1 + $0x1f0] ss:$8 sps:$4 sm:$0xff]   ;;  %v1791_v37 = vld [vmem:[%s2655_s1 + $0x1e4] ss:$8 sps:$4 sm:$0xff]   ;;  %v1790_v38 = vld [vmem:[%s2655_s1 + $0xe0] ss:$8 sps:$4 sm:$0xff]  }
  0x1c   :  { %v1794_v39 = vld [vmem:[%s2655_s1 + $0xd4] ss:$8 sps:$4 sm:$0xff]   ;;  %v1793_v40 = vld [vmem:[%s2655_s1 + $0x1e0] ss:$8 sps:$4 sm:$0xff]   ;;  %v1796_v42 = vld [vmem:[%s2655_s1 + $0xd0] ss:$8 sps:$4 sm:$0xff]  }
  0x1d   :  { %680 = vmatpush1.bf16.msra.mxu0 %v1754_v14  ;;  %v1797_v41 = vld [vmem:[%s2655_s1 + $0x1d4] ss:$8 sps:$4 sm:$0xff]   ;;  %v1800_v43 = vld [vmem:[%s2655_s1 + $0xc4] ss:$8 sps:$4 sm:$0xff]   ;;  %v1799_v44 = vld [vmem:[%s2655_s1 + $0x1d0] ss:$8 sps:$4 sm:$0xff]  }
  0x1e   :  { %681 = vmatprep.subr.bf16.mxu0 %v1758_v15  ;;  %723 = vmatpush1.bf16.msra.mxu1 %v1757_v16  ;;  %v1803_v45 = vld [vmem:[%s2655_s1 + $0x1c4] ss:$8 sps:$4 sm:$0xff]   ;;  %v1802_v46 = vld [vmem:[%s2655_s1 + $0xc0] ss:$8 sps:$4 sm:$0xff]   ;;  %v1806_v48 = vld [vmem:[%s2655_s1 + $0xb4] ss:$8 sps:$4 sm:$0xff]  }
  0x1f   :  { %724 = vmatprep.subr.bf16.mxu1 %v1761_v17  ;;  %v1831_v47 = vld [vmem:[%s2654_s0 + $0x4] ss:$24 sps:$4 sm:$0xff]   ;;  %v1805_v49 = vld [vmem:[%s2655_s1 + $0x1c0] ss:$8 sps:$4 sm:$0xff]   ;;  %v1808_v52 = vld [vmem:[%s2655_s1 + $0xb0] ss:$8 sps:$4 sm:$0xff]  }
  0x20   :  { %705 = vmatprep.mubr.bf16.mxu0 %v1831_v47  ;;  %v1809_v50 = vld [vmem:[%s2655_s1 + $0x1b4] ss:$8 sps:$4 sm:$0xff]   ;;  %v1838_v51 = vld [vmem:[%s2654_s0 + $0xc] ss:$24 sps:$4 sm:$0xff]   ;;  %v1811_v54 = vld [vmem:[%s2655_s1 + $0x1b0] ss:$8 sps:$4 sm:$0xff]  }
  0x21   :  { %682 = vmatpush1.bf16.msra.mxu0 %v1760_v18  ;;  %v1812_v53 = vld [vmem:[%s2655_s1 + $0xa4] ss:$8 sps:$4 sm:$0xff]   ;;  %748 = vmatprep.mubr.bf16.mxu1 %v1838_v51  ;;  %v1814_v56 = vld [vmem:[%s2655_s1 + $0xa0] ss:$8 sps:$4 sm:$0xff]   ;;  %v1818_v57 = vld [vmem:[%s2655_s1 + $0x94] ss:$8 sps:$4 sm:$0xff]  }
  0x22   :  { %683 = vmatprep.subr.bf16.mxu0 %v1764_v19  ;;  %725 = vmatpush1.bf16.msra.mxu1 %v1763_v20  ;;  %v1815_v55 = vld [vmem:[%s2655_s1 + $0x1a4] ss:$8 sps:$4 sm:$0xff]   ;;  %v1817_v58 = vld [vmem:[%s2655_s1 + $0x1a0] ss:$8 sps:$4 sm:$0xff]   ;;  %v1821_v59 = vld [vmem:[%s2655_s1 + $0x194] ss:$8 sps:$4 sm:$0xff]  }
  0x23   :  { %726 = vmatprep.subr.bf16.mxu1 %v1767_v21  ;;  %v1820_v60 = vld [vmem:[%s2655_s1 + $0x90] ss:$8 sps:$4 sm:$0xff]   ;;  %v1824_v61 = vld [vmem:[%s2655_s1 + $0x84] ss:$8 sps:$4 sm:$0xff]   ;;  %v1826_v0 = vld [vmem:[%s2655_s1 + $0x80] ss:$8 sps:$4 sm:$0xff]  }
  0x24   :  { %v1823_v62 = vld [vmem:[%s2655_s1 + $0x190] ss:$8 sps:$4 sm:$0xff]   ;;  %v1827_v63 = vld [vmem:[%s2655_s1 + $0x184] ss:$8 sps:$4 sm:$0xff]   ;;  %v1835_v1 = vld [vmem:[%s2655_s1 + $0x274] ss:$8 sps:$4 sm:$0xff]  }
  0x25   :  { %684 = vmatpush1.bf16.msra.mxu0 %v1766_v22  ;;  %v1832_v2 = vld [vmem:[%s2655_s1 + $0x180] ss:$8 sps:$4 sm:$0xff]   ;;  %v1833_v4 = vld [vmem:[%s2655_s1 + $0x270] ss:$8 sps:$4 sm:$0xff]   ;;  %v1841_v6 = vld [vmem:[%s2655_s1 + $0x264] ss:$8 sps:$4 sm:$0xff]  }
  0x26   :  { %685 = vmatprep.subr.bf16.mxu0 %v1770_v23  ;;  %727 = vmatpush1.bf16.msra.mxu1 %v1769_v24  ;;  %v1829_v3 = vld [vmem:[%s2654_s0] ss:$24 sps:$4 sm:$0xff]   ;;  %v1886_v8 = vld [vmem:[%s2654_s0 + $0x14] ss:$24 sps:$4 sm:$0xff]   ;;  %s802_s15 = sld [smem:[#allocation2]] }
  0x27   :  { %728 = vmatprep.subr.bf16.mxu1 %v1773_v25  ;;  %v1836_v5 = vld [vmem:[%s2654_s0 + $0x8] ss:$24 sps:$4 sm:$0xff]   ;;  %v1844_v9 = vld [vmem:[%s2655_s1 + $0x254] ss:$8 sps:$4 sm:$0xff]   ;;  %v1842_v10 = vld [vmem:[%s2655_s1 + $0x250] ss:$8 sps:$4 sm:$0xff]  }
  0x28   :  { %v1839_v7 = vld [vmem:[%s2655_s1 + $0x260] ss:$8 sps:$4 sm:$0xff]   ;;  %v1847_v11 = vld [vmem:[%s2655_s1 + $0x244] ss:$8 sps:$4 sm:$0xff]   ;;  %v1850_v13 = vld [vmem:[%s2655_s1 + $0x234] ss:$8 sps:$4 sm:$0xff]  }
  0x29   :  { %686 = vmatpush1.bf16.msra.mxu0 %v1772_v26  ;;  %v1845_v12 = vld [vmem:[%s2655_s1 + $0x240] ss:$8 sps:$4 sm:$0xff]   ;;  %v1848_v14 = vld [vmem:[%s2655_s1 + $0x230] ss:$8 sps:$4 sm:$0xff]   ;;  %v1853_v15 = vld [vmem:[%s2655_s1 + $0x224] ss:$8 sps:$4 sm:$0xff]  }
  0x2a   :  { %687 = vmatprep.subr.bf16.mxu0 %v1776_v27  ;;  %729 = vmatpush1.bf16.msra.mxu1 %v1775_v28  ;;  %v1851_v16 = vld [vmem:[%s2655_s1 + $0x220] ss:$8 sps:$4 sm:$0xff]   ;;  %v1856_v17 = vld [vmem:[%s2655_s1 + $0x214] ss:$8 sps:$4 sm:$0xff]   ;;  %v1854_v18 = vld [vmem:[%s2655_s1 + $0x210] ss:$8 sps:$4 sm:$0xff]  }
  0x2b   :  { %730 = vmatprep.subr.bf16.mxu1 %v1779_v29  ;;  %v1859_v19 = vld [vmem:[%s2655_s1 + $0x204] ss:$8 sps:$4 sm:$0xff]   ;;  %v1857_v20 = vld [vmem:[%s2655_s1 + $0x200] ss:$8 sps:$4 sm:$0xff]   ;;  %v1862_v21 = vld [vmem:[%s2655_s1 + $0x2f4] ss:$8 sps:$4 sm:$0xff]  }
  0x2c   :  { %v1860_v22 = vld [vmem:[%s2655_s1 + $0x2f0] ss:$8 sps:$4 sm:$0xff]   ;;  %v1865_v23 = vld [vmem:[%s2655_s1 + $0x2e4] ss:$8 sps:$4 sm:$0xff]   ;;  %v1863_v24 = vld [vmem:[%s2655_s1 + $0x2e0] ss:$8 sps:$4 sm:$0xff]  }
  0x2d   :  { %688 = vmatpush1.bf16.msra.mxu0 %v1778_v30  ;;  %v1868_v25 = vld [vmem:[%s2655_s1 + $0x2d4] ss:$8 sps:$4 sm:$0xff]   ;;  %v1866_v26 = vld [vmem:[%s2655_s1 + $0x2d0] ss:$8 sps:$4 sm:$0xff]   ;;  %v1871_v27 = vld [vmem:[%s2655_s1 + $0x2c4] ss:$8 sps:$4 sm:$0xff]  }
  0x2e   :  { %689 = vmatprep.subr.bf16.mxu0 %v1782_v31  ;;  %731 = vmatpush1.bf16.msra.mxu1 %v1781_v32  ;;  %v1869_v28 = vld [vmem:[%s2655_s1 + $0x2c0] ss:$8 sps:$4 sm:$0xff]   ;;  %v1874_v29 = vld [vmem:[%s2655_s1 + $0x2b4] ss:$8 sps:$4 sm:$0xff]   ;;  %v1872_v30 = vld [vmem:[%s2655_s1 + $0x2b0] ss:$8 sps:$4 sm:$0xff]  }
  0x2f   :  { %732 = vmatprep.subr.bf16.mxu1 %v1785_v33  ;;  %v1877_v31 = vld [vmem:[%s2655_s1 + $0x2a4] ss:$8 sps:$4 sm:$0xff]   ;;  %v1875_v32 = vld [vmem:[%s2655_s1 + $0x2a0] ss:$8 sps:$4 sm:$0xff]   ;;  %v1880_v33 = vld [vmem:[%s2655_s1 + $0x294] ss:$8 sps:$4 sm:$0xff]  }
  0x30   :  { %v1899_v47 = vld [vmem:[%s2657_s3 + $0x30] ss:$8 sps:$4 sm:$0xff]  }
  0x31   :  { %690 = vmatpush2.bf16.msra.mxu0 %v1784_v34  ;;  %v1878_v34 = vld [vmem:[%s2655_s1 + $0x290] ss:$8 sps:$4 sm:$0xff]  }
  0x32   :  { %691 = vmatprep.subr.bf16.mxu0 %v1788_v35  ;;  %733 = vmatpush2.bf16.msra.mxu1 %v1787_v36  ;;  %v1883_v35 = vld [vmem:[%s2655_s1 + $0x284] ss:$8 sps:$4 sm:$0xff]   ;;  %v1881_v36 = vld [vmem:[%s2655_s1 + $0x280] ss:$8 sps:$4 sm:$0xff]   ;;  %v1905_v51 = vld [vmem:[%s2657_s3 + $0x10] ss:$8 sps:$4 sm:$0xff]  }
  0x33   :  { %734 = vmatprep.subr.bf16.mxu1 %v1791_v37  ;;  %v1884_v37 = vld [vmem:[%s2654_s0 + $0x10] ss:$24 sps:$4 sm:$0xff]  }
  0x35   :  { %692 = vmatpush2.bf16.msra.mxu0 %v1790_v38  ;;  %v1887_v38 = vld [vmem:[%s2657_s3 + $0x70] ss:$8 sps:$4 sm:$0xff]  }
  0x36   :  { %693 = vmatprep.subr.bf16.mxu0 %v1794_v39  ;;  %735 = vmatpush2.bf16.msra.mxu1 %v1793_v40  ;;  %v1889_v39 = vld [vmem:[%s2657_s3 + $0x74] ss:$8 sps:$4 sm:$0xff]   ;;  %v1892_v40 = vld [vmem:[%s2657_s3 + $0x64] ss:$8 sps:$4 sm:$0xff]  }
  0x37   :  { %736 = vmatprep.subr.bf16.mxu1 %v1797_v41  ;;  %v1890_v41 = vld [vmem:[%s2657_s3 + $0x60] ss:$8 sps:$4 sm:$0xff]  }
  0x39   :  { %694 = vmatpush2.bf16.msra.mxu0 %v1796_v42  ;;  %v1895_v42 = vld [vmem:[%s2657_s3 + $0x54] ss:$8 sps:$4 sm:$0xff]  }
  0x3a   :  { %695 = vmatprep.subr.bf16.mxu0 %v1800_v43  ;;  %737 = vmatpush2.bf16.msra.mxu1 %v1799_v44  ;;  %v1893_v43 = vld [vmem:[%s2657_s3 + $0x50] ss:$8 sps:$4 sm:$0xff]   ;;  %v1898_v44 = vld [vmem:[%s2657_s3 + $0x44] ss:$8 sps:$4 sm:$0xff]  }
  0x3b   :  { %738 = vmatprep.subr.bf16.mxu1 %v1803_v45  ;;  %v1896_v45 = vld [vmem:[%s2657_s3 + $0x40] ss:$8 sps:$4 sm:$0xff]  }
  0x3d   :  { %696 = vmatpush2.bf16.msra.mxu0 %v1802_v46  ;;  %v1901_v46 = vld [vmem:[%s2657_s3 + $0x34] ss:$8 sps:$4 sm:$0xff]  }
  0x3e   :  { %697 = vmatprep.subr.bf16.mxu0 %v1806_v48  ;;  %739 = vmatpush2.bf16.msra.mxu1 %v1805_v49  ;;  %v1904_v48 = vld [vmem:[%s2657_s3 + $0x24] ss:$8 sps:$4 sm:$0xff]   ;;  %v1902_v49 = vld [vmem:[%s2657_s3 + $0x20] ss:$8 sps:$4 sm:$0xff]  }
  0x3f   :  { %740 = vmatprep.subr.bf16.mxu1 %v1809_v50  ;;  %v1907_v50 = vld [vmem:[%s2657_s3 + $0x14] ss:$8 sps:$4 sm:$0xff]  }
  0x41   :  { %698 = vmatpush2.bf16.msra.mxu0 %v1808_v52  ;;  %v1910_v52 = vld [vmem:[%s2657_s3 + $0x4] ss:$8 sps:$4 sm:$0xff]  }
  0x42   :  { %699 = vmatprep.subr.bf16.mxu0 %v1812_v53  ;;  %741 = vmatpush2.bf16.msra.mxu1 %v1811_v54  ;;  %v1908_v53 = vld [vmem:[%s2657_s3] ss:$8 sps:$4 sm:$0xff]   ;;  %v1913_v54 = vld [vmem:[%s2657_s3 + $0xf4] ss:$8 sps:$4 sm:$0xff]  }
  0x43   :  { %742 = vmatprep.subr.bf16.mxu1 %v1815_v55  ;;  %v1911_v55 = vld [vmem:[%s2657_s3 + $0xf0] ss:$8 sps:$4 sm:$0xff]  }
  0x45   :  { %700 = vmatpush2.bf16.msra.mxu0 %v1814_v56  ;;  %v1916_v56 = vld [vmem:[%s2657_s3 + $0xe4] ss:$8 sps:$4 sm:$0xff]  }
  0x46   :  { %701 = vmatprep.subr.bf16.mxu0 %v1818_v57  ;;  %743 = vmatpush2.bf16.msra.mxu1 %v1817_v58  ;;  %v1914_v57 = vld [vmem:[%s2657_s3 + $0xe0] ss:$8 sps:$4 sm:$0xff]   ;;  %v1919_v58 = vld [vmem:[%s2657_s3 + $0xd4] ss:$8 sps:$4 sm:$0xff]  }
  0x47   :  { %744 = vmatprep.subr.bf16.mxu1 %v1821_v59  ;;  %v1917_v59 = vld [vmem:[%s2657_s3 + $0xd0] ss:$8 sps:$4 sm:$0xff]  }
  0x49   :  { %702 = vmatpush2.bf16.msra.mxu0 %v1820_v60  ;;  %v1922_v60 = vld [vmem:[%s2657_s3 + $0xc4] ss:$8 sps:$4 sm:$0xff]  }
  0x4a   :  { %703 = vmatprep.subr.bf16.mxu0 %v1824_v61  ;;  %745 = vmatpush2.bf16.msra.mxu1 %v1823_v62  ;;  %v1920_v61 = vld [vmem:[%s2657_s3 + $0xc0] ss:$8 sps:$4 sm:$0xff]   ;;  %v1925_v62 = vld [vmem:[%s2657_s3 + $0xb4] ss:$8 sps:$4 sm:$0xff]  }
  0x4b   :  { %746 = vmatprep.subr.bf16.mxu1 %v1827_v63  ;;  %v1923_v63 = vld [vmem:[%s2657_s3 + $0xb0] ss:$8 sps:$4 sm:$0xff]  }
  0x4d   :  { %704 = vmatpush2.bf16.msra.mxu0 %v1826_v0  ;;  %v1928_v0 = vld [vmem:[%s2657_s3 + $0xa4] ss:$8 sps:$4 sm:$0xff]  }
  0x4e   :  { %759 = vmatprep.subr.bf16.mxu0 %v1835_v1  ;;  %747 = vmatpush2.bf16.msra.mxu1 %v1832_v2  ;;  %v1926_v1 = vld [vmem:[%s2657_s3 + $0xa0] ss:$8 sps:$4 sm:$0xff]   ;;  %v1931_v2 = vld [vmem:[%s2657_s3 + $0x94] ss:$8 sps:$4 sm:$0xff]  }
  0x4f   :  { %1009 = vmatprep.subr.bf16.mxu1 %v1889_v39 }
  0x50   :  { %706 = vmatmul.mubr.bf16.vlgmr.msra.gmra.mxu0 %v1829_v3  ;;  %v1929_v3 = vld [vmem:[%s2657_s3 + $0x90] ss:$8 sps:$4 sm:$0xff]  }
  0x51   :  { %760 = vmatpush1.bf16.msra.mxu0 %v1833_v4  ;;  %749 = vmatmul.mubr.bf16.vlgmr.msra.gmra.mxu1 %v1836_v5  ;;  %v1934_v4 = vld [vmem:[%s2657_s3 + $0x84] ss:$8 sps:$4 sm:$0xff]   ;;  %v1932_v5 = vld [vmem:[%s2657_s3 + $0x80] ss:$8 sps:$4 sm:$0xff]  }
  0x52   :  { %761 = vmatprep.subr.bf16.mxu0 %v1841_v6  ;;  %791 = vmatprep.mubr.bf16.mxu0 %v1886_v8  ;;  %v1935_v6 = vld [vmem:[%s2659_s5 + $0x70] ss:$8 sps:$4 sm:$0xff]   ;;  %v1940_v8 = vld [vmem:[%s2659_s5 + $0x64] ss:$8 sps:$4 sm:$0xff]  }
  0x53   :  { %1010 = vmatpush1.bf16.msra.mxu1 %v1887_v38  ;;  %v151_v38 = vld [vmem:[%s2656_s2] sm:$0x3] }
  0x54   :  { %1011 = vmatprep.subr.bf16.mxu1 %v1892_v40 }
  0x55   :  { %762 = vmatpush1.bf16.msra.mxu0 %v1839_v7  ;;  %v1937_v7 = vld [vmem:[%s2659_s5 + $0x74] ss:$8 sps:$4 sm:$0xff]  }
  0x56   :  { %763 = vmatprep.subr.bf16.mxu0 %v1844_v9  ;;  %v1938_v9 = vld [vmem:[%s2659_s5 + $0x60] ss:$8 sps:$4 sm:$0xff]  }
  0x57   :  { %1012 = vmatpush1.bf16.msra.mxu1 %v1890_v41 }
  0x58   :  { %1013 = vmatprep.subr.bf16.mxu1 %v1895_v42 }
  0x59   :  { %764 = vmatpush1.bf16.msra.mxu0 %v1842_v10  ;;  %v1943_v10 = vld [vmem:[%s2659_s5 + $0x54] ss:$8 sps:$4 sm:$0xff]  }
  0x5a   :  { %765 = vmatprep.subr.bf16.mxu0 %v1847_v11  ;;  %v1941_v11 = vld [vmem:[%s2659_s5 + $0x50] ss:$8 sps:$4 sm:$0xff]  }
  0x5b   :  { %1014 = vmatpush1.bf16.msra.mxu1 %v1893_v43 }
  0x5c   :  { %1015 = vmatprep.subr.bf16.mxu1 %v1898_v44 }
  0x5d   :  { %766 = vmatpush1.bf16.msra.mxu0 %v1845_v12  ;;  %v1946_v12 = vld [vmem:[%s2659_s5 + $0x44] ss:$8 sps:$4 sm:$0xff]  }
  0x5e   :  { %767 = vmatprep.subr.bf16.mxu0 %v1850_v13  ;;  %v1944_v13 = vld [vmem:[%s2659_s5 + $0x40] ss:$8 sps:$4 sm:$0xff]  }
  0x5f   :  { %1016 = vmatpush1.bf16.msra.mxu1 %v1896_v45 }
  0x60   :  { %1017 = vmatprep.subr.bf16.mxu1 %v1901_v46 }
  0x61   :  { %768 = vmatpush1.bf16.msra.mxu0 %v1848_v14  ;;  %v1949_v14 = vld [vmem:[%s2659_s5 + $0x34] ss:$8 sps:$4 sm:$0xff]  }
  0x62   :  { %769 = vmatprep.subr.bf16.mxu0 %v1853_v15  ;;  %v1947_v15 = vld [vmem:[%s2659_s5 + $0x30] ss:$8 sps:$4 sm:$0xff]  }
  0x63   :  { %1018 = vmatpush1.bf16.msra.mxu1 %v1899_v47 }
  0x64   :  { %1019 = vmatprep.subr.bf16.mxu1 %v1904_v48 }
  0x65   :  { %770 = vmatpush1.bf16.msra.mxu0 %v1851_v16  ;;  %v1952_v16 = vld [vmem:[%s2659_s5 + $0x24] ss:$8 sps:$4 sm:$0xff]  }
  0x66   :  { %771 = vmatprep.subr.bf16.mxu0 %v1856_v17  ;;  %v1950_v17 = vld [vmem:[%s2659_s5 + $0x20] ss:$8 sps:$4 sm:$0xff]  }
  0x67   :  { %1020 = vmatpush1.bf16.msra.mxu1 %v1902_v49 }
  0x68   :  { %1021 = vmatprep.subr.bf16.mxu1 %v1907_v50 }
  0x69   :  { %772 = vmatpush1.bf16.msra.mxu0 %v1854_v18  ;;  %v1955_v18 = vld [vmem:[%s2659_s5 + $0x14] ss:$8 sps:$4 sm:$0xff]  }
  0x6a   :  { %773 = vmatprep.subr.bf16.mxu0 %v1859_v19  ;;  %v1953_v19 = vld [vmem:[%s2659_s5 + $0x10] ss:$8 sps:$4 sm:$0xff]  }
  0x6b   :  { %1022 = vmatpush1.bf16.msra.mxu1 %v1905_v51 }
  0x6c   :  { %1023 = vmatprep.subr.bf16.mxu1 %v1910_v52 }
  0x6d   :  { %774 = vmatpush1.bf16.msra.mxu0 %v1857_v20  ;;  %v1958_v20 = vld [vmem:[%s2659_s5 + $0x4] ss:$8 sps:$4 sm:$0xff]  }
  0x6e   :  { %775 = vmatprep.subr.bf16.mxu0 %v1862_v21  ;;  %v1956_v21 = vld [vmem:[%s2659_s5] ss:$8 sps:$4 sm:$0xff]  }
  0x6f   :  { %1024 = vmatpush1.bf16.msra.mxu1 %v1908_v53 }
  0x70   :  { %1025 = vmatprep.subr.bf16.mxu1 %v1913_v54 }
  0x71   :  { %776 = vmatpush2.bf16.msra.mxu0 %v1860_v22  ;;  %v1961_v22 = vld [vmem:[%s2659_s5 + $0xf4] ss:$8 sps:$4 sm:$0xff]  }
  0x72   :  { %777 = vmatprep.subr.bf16.mxu0 %v1865_v23  ;;  %v1959_v23 = vld [vmem:[%s2659_s5 + $0xf0] ss:$8 sps:$4 sm:$0xff]  }
  0x73   :  { %1026 = vmatpush2.bf16.msra.mxu1 %v1911_v55 }
  0x74   :  { %1027 = vmatprep.subr.bf16.mxu1 %v1916_v56 }
  0x75   :  { %778 = vmatpush2.bf16.msra.mxu0 %v1863_v24  ;;  %v1964_v24 = vld [vmem:[%s2659_s5 + $0xe4] ss:$8 sps:$4 sm:$0xff]  }
  0x76   :  { %779 = vmatprep.subr.bf16.mxu0 %v1868_v25  ;;  %v1962_v25 = vld [vmem:[%s2659_s5 + $0xe0] ss:$8 sps:$4 sm:$0xff]  }
  0x77   :  { %1028 = vmatpush2.bf16.msra.mxu1 %v1914_v57 }
  0x78   :  { %1029 = vmatprep.subr.bf16.mxu1 %v1919_v58 }
  0x79   :  { %780 = vmatpush2.bf16.msra.mxu0 %v1866_v26  ;;  %v1967_v26 = vld [vmem:[%s2659_s5 + $0xd4] ss:$8 sps:$4 sm:$0xff]  }
  0x7a   :  { %781 = vmatprep.subr.bf16.mxu0 %v1871_v27  ;;  %v1965_v27 = vld [vmem:[%s2659_s5 + $0xd0] ss:$8 sps:$4 sm:$0xff]  }
  0x7b   :  { %1030 = vmatpush2.bf16.msra.mxu1 %v1917_v59 }
  0x7c   :  { %1031 = vmatprep.subr.bf16.mxu1 %v1922_v60 }
  0x7d   :  { %782 = vmatpush2.bf16.msra.mxu0 %v1869_v28  ;;  %v1970_v28 = vld [vmem:[%s2659_s5 + $0xc4] ss:$8 sps:$4 sm:$0xff]  }
  0x7e   :  { %783 = vmatprep.subr.bf16.mxu0 %v1874_v29  ;;  %v1968_v29 = vld [vmem:[%s2659_s5 + $0xc0] ss:$8 sps:$4 sm:$0xff]  }
  0x7f   :  { %1032 = vmatpush2.bf16.msra.mxu1 %v1920_v61 }
  0x80   :  { %1033 = vmatprep.subr.bf16.mxu1 %v1925_v62 }
  0x81   :  { %784 = vmatpush2.bf16.msra.mxu0 %v1872_v30  ;;  %v1973_v30 = vld [vmem:[%s2659_s5 + $0xb4] ss:$8 sps:$4 sm:$0xff]  }
  0x82   :  { %785 = vmatprep.subr.bf16.mxu0 %v1877_v31  ;;  %v1971_v31 = vld [vmem:[%s2659_s5 + $0xb0] ss:$8 sps:$4 sm:$0xff]  }
  0x83   :  { %1034 = vmatpush2.bf16.msra.mxu1 %v1923_v63 }
  0x84   :  { %1035 = vmatprep.subr.bf16.mxu1 %v1928_v0 }
  0x85   :  { %786 = vmatpush2.bf16.msra.mxu0 %v1875_v32  ;;  %v153_v32 = vlaneseq }
  0x86   :  { %787 = vmatprep.subr.bf16.mxu0 %v1880_v33 }
  0x87   :  { %1036 = vmatpush2.bf16.msra.mxu1 %v1926_v1  ;;  %v1976_v1 = vld [vmem:[%s2659_s5 + $0xa4] ss:$8 sps:$4 sm:$0xff]  }
  0x88   :  { %1037 = vmatprep.subr.bf16.mxu1 %v1931_v2  ;;  %v1974_v2 = vld [vmem:[%s2659_s5 + $0xa0] ss:$8 sps:$4 sm:$0xff]  }
  0x89   :  { %788 = vmatpush2.bf16.msra.mxu0 %v1878_v34  ;;  %v154_v34 = vshrl.u32 %v153_v32, 7 }
  0x8a   :  { %789 = vmatprep.subr.bf16.mxu0 %v1883_v35 }
  0x8b   :  { %1038 = vmatpush2.bf16.msra.mxu1 %v1929_v3  ;;  %v2565_v39 = vsub.s32 0, %v154_v34  ;;  %v1979_v3 = vld [vmem:[%s2659_s5 + $0x94] ss:$8 sps:$4 sm:$0xff]  }
  0x8c   :  { %1039 = vmatprep.subr.bf16.mxu1 %v1934_v4  ;;  %v1977_v4 = vld [vmem:[%s2659_s5 + $0x90] ss:$8 sps:$4 sm:$0xff]  }
  0x8d   :  { %790 = vmatpush2.bf16.msra.mxu0 %v1881_v36  ;;  %v156_v43 = vrot.slane %v151_v38, %v2565_v39 }
  0x8e   :  { %1272 = vmatprep.subr.bf16.mxu0 %v1937_v7  ;;  %v1983_v7 = vld [vmem:[%s2661_s7 + $0x78] sm:$0xff]  }
  0x8f   :  { %1040 = vmatpush2.bf16.msra.mxu1 %v1932_v5  ;;  %v1982_v5 = vld [vmem:[%s2659_s5 + $0x84] ss:$8 sps:$4 sm:$0xff]  }
  0x90   :  { %792 = vmatmul.mubr.bf16.vlgmr.msra.gmra.mxu0 %v1884_v37  ;;  %v2560_v37 = vsub.s32 1, %v154_v34  ;;  %1711 = vmatprep.subr.bf16.mxu1 %v1983_v7 }
  0x91   :  { %1273 = vmatpush1.bf16.msra.mxu0 %v1935_v6  ;;  %v1980_v6 = vld [vmem:[%s2659_s5 + $0x80] ss:$8 sps:$4 sm:$0xff]   ;;  %s1659_s5 = sld [smem:[#allocation2 + $0x1]] }
  0x92   :  { %1274 = vmatprep.subr.bf16.mxu0 %v1940_v8  ;;  %v160_v42 = vrot.slane %v151_v38, %v2560_v37  ;;  %v1984_v8 = vld [vmem:[%s2661_s7 + $0x38] sm:$0xff]  }
  0x95   :  { %1275 = vmatpush1.bf16.msra.mxu0 %v1938_v9  ;;  %v1985_v9 = vld [vmem:[%s2661_s7 + $0x70] sm:$0xff]  }
  0x96   :  { %1276 = vmatprep.subr.bf16.mxu0 %v1943_v10  ;;  %v1986_v10 = vld [vmem:[%s2661_s7 + $0x30] sm:$0xff]  }
  0x99   :  { %1277 = vmatpush1.bf16.msra.mxu0 %v1941_v11  ;;  %v1987_v11 = vld [vmem:[%s2661_s7 + $0x68] sm:$0xff]  }
  0x9a   :  { %1278 = vmatprep.subr.bf16.mxu0 %v1946_v12  ;;  %v1988_v12 = vld [vmem:[%s2661_s7 + $0x28] sm:$0xff]  }
  0x9d   :  { %1279 = vmatpush1.bf16.msra.mxu0 %v1944_v13  ;;  %v1989_v13 = vld [vmem:[%s2661_s7 + $0x60] sm:$0xff]  }
  0x9e   :  { %1280 = vmatprep.subr.bf16.mxu0 %v1949_v14  ;;  %v1990_v14 = vld [vmem:[%s2661_s7 + $0x20] sm:$0xff]  }
  0xa1   :  { %1281 = vmatpush1.bf16.msra.mxu0 %v1947_v15  ;;  %v1991_v15 = vld [vmem:[%s2661_s7 + $0x58] sm:$0xff]  }
  0xa2   :  { %1282 = vmatprep.subr.bf16.mxu0 %v1952_v16  ;;  %v837_v16 = vld [vmem:[%s2658_s4] sm:$0x3] }
  0xa5   :  { %1283 = vmatpush1.bf16.msra.mxu0 %v1950_v17  ;;  %v846_v17 = vrot.slane %v837_v16, %v2560_v37 }
  0xa6   :  { %1284 = vmatprep.subr.bf16.mxu0 %v1955_v18  ;;  %v842_v18 = vrot.slane %v837_v16, %v2565_v39 }
  0xa9   :  { %1285 = vmatpush1.bf16.msra.mxu0 %v1953_v19 }
  0xaa   :  { %1286 = vmatprep.subr.bf16.mxu0 %v1958_v20 }
  0xad   :  { %1287 = vmatpush1.bf16.msra.mxu0 %v1956_v21 }
  0xae   :  { %1288 = vmatprep.subr.bf16.mxu0 %v1961_v22 }
  0xb1   :  { %1289 = vmatpush2.bf16.msra.mxu0 %v1959_v23 }
  0xb2   :  { %1290 = vmatprep.subr.bf16.mxu0 %v1964_v24  ;;  %v1056_v24 = vstv %s802_s15 }
  0xb5   :  { %1291 = vmatpush2.bf16.msra.mxu0 %v1962_v25 }
  0xb6   :  { %1292 = vmatprep.subr.bf16.mxu0 %v1967_v26 }
  0xb9   :  { %1293 = vmatpush2.bf16.msra.mxu0 %v1965_v27 }
  0xba   :  { %1294 = vmatprep.subr.bf16.mxu0 %v1970_v28 }
  0xbd   :  { %1295 = vmatpush2.bf16.msra.mxu0 %v1968_v29 }
  0xbe   :  { %1296 = vmatprep.subr.bf16.mxu0 %v1973_v30 }
  0xc1   :  { %1297 = vmatpush2.bf16.msra.mxu0 %v1971_v31 }
  0xc2   :  { %1298 = vmatprep.subr.bf16.mxu0 %v1976_v1 }
  0xc5   :  { %1299 = vmatpush2.bf16.msra.mxu0 %v1974_v2 }
  0xc6   :  { %1300 = vmatprep.subr.bf16.mxu0 %v1979_v3 }
  0xc9   :  { %1301 = vmatpush2.bf16.msra.mxu0 %v1977_v4  ;;  %v1692_v4 = vld [vmem:[%s2662_s8] ss:$0 sm:$0xff] }
  0xca   :  { %1302 = vmatprep.subr.bf16.mxu0 %v1982_v5 }
  0xcd   :  { %1303 = vmatpush2.bf16.msra.mxu0 %v1980_v6 }
 0x110   :  { %v707_v33 = vpop.f32.mrf.mxu0 }
 0x111   :  { %v750_v36 = vpop.f32.mrf.mxu1  ;;  %v708_v50 = vadd.f32 %v707_v33, %v156_v43 }
 0x112   :  { %v709_v35 = vpop.f32.mrf.mxu0 }
 0x113   :  { %v752_v41 = vpop.f32.mrf.mxu1  ;;  %v710_v48 = vadd.f32 %v709_v35, %v160_v42  ;;  %v751_v57 = vadd.f32 %v750_v36, %v708_v50 }
 0x114   :  { %v711_v40 = vpop.f32.mrf.mxu0 }
 0x115   :  { %v754_v45 = vpop.f32.mrf.mxu1  ;;  %v712_v46 = vadd.f32 %v711_v40, %v156_v43  ;;  %v753_v55 = vadd.f32 %v752_v41, %v710_v48  ;;  %v1992_v40 = vld [vmem:[%s2661_s7 + $0x18] sm:$0xff]   ;;  %v1993_v41 = vld [vmem:[%s2661_s7 + $0x50] sm:$0xff]   ;;  %v1995_v43 = vld [vmem:[%s2661_s7 + $0x48] sm:$0xff]  }
 0x116   :  { %v713_v44 = vpop.f32.mrf.mxu0 }
 0x117   :  { %v714_v49 = vadd.f32 %v713_v44, %v160_v42  ;;  %v756_v51 = vpop.f32.mrf.mxu1  ;;  %v755_v53 = vadd.f32 %v754_v45, %v712_v46  ;;  %v1994_v42 = vld [vmem:[%s2661_s7 + $0x10] sm:$0xff]   ;;  %v1996_v44 = vld [vmem:[%s2661_s7 + $0x8] sm:$0xff]   ;;  %v1997_v45 = vld [vmem:[%s2661_s7 + $0x40] sm:$0xff]  }
 0x118   :  { %v1998_v46 = vld [vmem:[%s2661_s7] sm:$0xff]  }
 0x119   :  { %v757_v56 = vadd.f32 %v756_v51, %v714_v49 }
 0x150   :  { %v793_v47 = vpop.f32.mrf.mxu0 }
 0x151   :  { %v794_v62 = vadd.f32 %v793_v47, %v751_v57  ;;  %v1100_v47 = vld [vmem:[%s2660_s6] sm:$0x3] }
 0x152   :  { %v795_v52 = vpop.f32.mrf.mxu0  ;;  %v1109_v48 = vrot.slane %v1100_v47, %v2560_v37  ;;  %v1105_v49 = vrot.slane %v1100_v47, %v2565_v39 }
 0x153   :  { %v796_v60 = vadd.f32 %v795_v52, %v753_v55  ;;  %v1319_v55 = vstv %s1659_s5 }
 0x154   :  { %v797_v54 = vpop.f32.mrf.mxu0 }
 0x155   :  { %v798_v58 = vadd.f32 %v797_v54, %v755_v53 }
 0x156   :  { %v799_v59 = vpop.f32.mrf.mxu0 }
 0x157   :  { %v800_v61 = vadd.f32 %v799_v59, %v757_v56  ;;  %v803_v0 = vpack.c.bf16 %v798_v58, %v794_v62 }
 0x159   :  { %v804_v63 = vpack.c.bf16 %v800_v61, %v796_v60 }
 0x15b   :  { %1041 = vmatprep.mubr.bf16.mxu1 %v804_v63 }
 0x15c   :  { %1042 = vmatmul.mubr.bf16.vlgmr.msra.gmra.mxu1 %v803_v0 }
 0x15d   :  { %1712 = vmatpush3.bf16.msra.mxu1 %v1984_v8 }
 0x15e   :  { %1713 = vmatprep.subr.bf16.mxu1 %v1985_v9 }
 0x161   :  { %1714 = vmatpush3.bf16.msra.mxu1 %v1986_v10 }
 0x162   :  { %1715 = vmatprep.subr.bf16.mxu1 %v1987_v11 }
 0x165   :  { %1716 = vmatpush3.bf16.msra.mxu1 %v1988_v12 }
 0x166   :  { %1717 = vmatprep.subr.bf16.mxu1 %v1989_v13 }
 0x169   :  { %1718 = vmatpush3.bf16.msra.mxu1 %v1990_v14 }
 0x16a   :  { %1719 = vmatprep.subr.bf16.mxu1 %v1991_v15 }
 0x16d   :  { %1720 = vmatpush3.bf16.msra.mxu1 %v1992_v40 }
 0x16e   :  { %1721 = vmatprep.subr.bf16.mxu1 %v1993_v41 }
 0x171   :  { %1722 = vmatpush3.bf16.msra.mxu1 %v1994_v42 }
 0x172   :  { %1723 = vmatprep.subr.bf16.mxu1 %v1995_v43 }
 0x175   :  { %1724 = vmatpush3.bf16.msra.mxu1 %v1996_v44 }
 0x176   :  { %1725 = vmatprep.subr.bf16.mxu1 %v1997_v45 }
 0x179   :  { %1726 = vmatpush3.bf16.msra.mxu1 %v1998_v46 }
 0x21c   :  { %v1043_v19 = vpop.f32.mrf.mxu1 }
 0x21d   :  { %v1044_v22 = vadd.f32 %v1043_v19, %v842_v18 }
 0x21e   :  { %v1045_v20 = vpop.f32.mrf.mxu1 }
 0x21f   :  { %v1046_v21 = vadd.f32 %v1045_v20, %v846_v17  ;;  %v1057_v30 = vmul.f32 %v1056_v24, %v1044_v22  ;;  %vm1052_vm2 = vcmp.gt.f32.partialorder %v1044_v22, 0.0 }
 0x220   :  { %v1047_v23 = vpop.f32.mrf.mxu1 }
 0x221   :  { %v1048_v25 = vadd.f32 %v1047_v23, %v842_v18  ;;  %v1058_v27 = vmul.f32 %v1056_v24, %v1046_v21  ;;  %vm1053_vm1 = vcmp.gt.f32.partialorder %v1046_v21, 0.0  ;;  %v1061_v35 = vsel %vm1052_vm2, %v1044_v22, %v1057_v30 }
 0x222   :  { %v1049_v26 = vpop.f32.mrf.mxu1 }
 0x223   :  { %vm1054_vm0 = vcmp.gt.f32.partialorder %v1048_v25, 0.0  ;;  %v1059_v28 = vmul.f32 %v1056_v24, %v1048_v25  ;;  %v1050_v29 = vadd.f32 %v1049_v26, %v846_v17  ;;  %v1062_v33 = vsel %vm1053_vm1, %v1046_v21, %v1058_v27 }
 0x225   :  { %vm1055_vm3 = vcmp.gt.f32.partialorder %v1050_v29, 0.0  ;;  %v1060_v31 = vmul.f32 %v1056_v24, %v1050_v29  ;;  %v1063_v32 = vsel %vm1054_vm0, %v1048_v25, %v1059_v28 }
 0x226   :  { %v1066_v38 = vpack.c.bf16 %v1063_v32, %v1061_v35 }
 0x227   :  { %v1064_v34 = vsel %vm1055_vm3, %v1050_v29, %v1060_v31 }
 0x228   :  { %v1067_v36 = vpack.c.bf16 %v1064_v34, %v1062_v33 }
 0x22a   :  { %1304 = vmatprep.mubr.bf16.mxu0 %v1067_v36 }
 0x22b   :  { %1305 = vmatmul.mubr.bf16.vlgmr.msra.gmra.mxu0 %v1066_v38 }
 0x2eb   :  { %v1306_v50 = vpop.f32.mrf.mxu0 }
 0x2ec   :  { %v1307_v53 = vadd.f32 %v1306_v50, %v1105_v49 }
 0x2ed   :  { %v1308_v51 = vpop.f32.mrf.mxu0 }
 0x2ee   :  { %v1309_v52 = vadd.f32 %v1308_v51, %v1109_v48  ;;  %v1320_v61 = vmul.f32 %v1319_v55, %v1307_v53  ;;  %vm1315_vm6 = vcmp.gt.f32.partialorder %v1307_v53, 0.0 }
 0x2ef   :  { %v1310_v54 = vpop.f32.mrf.mxu0 }
 0x2f0   :  { %v1311_v56 = vadd.f32 %v1310_v54, %v1105_v49  ;;  %v1321_v58 = vmul.f32 %v1319_v55, %v1309_v52  ;;  %vm1316_vm5 = vcmp.gt.f32.partialorder %v1309_v52, 0.0  ;;  %v1324_v0 = vsel %vm1315_vm6, %v1307_v53, %v1320_v61 }
 0x2f1   :  { %v1312_v57 = vpop.f32.mrf.mxu0 }
 0x2f2   :  { %vm1317_vm4 = vcmp.gt.f32.partialorder %v1311_v56, 0.0  ;;  %v1322_v59 = vmul.f32 %v1319_v55, %v1311_v56  ;;  %v1313_v60 = vadd.f32 %v1312_v57, %v1109_v48  ;;  %v1325_v63 = vsel %vm1316_vm5, %v1309_v52, %v1321_v58 }
 0x2f4   :  { %vm1318_vm7 = vcmp.gt.f32.partialorder %v1313_v60, 0.0  ;;  %v1323_v62 = vmul.f32 %v1319_v55, %v1313_v60  ;;  %v1326_v37 = vsel %vm1317_vm4, %v1311_v56, %v1322_v59 }
 0x2f5   :  { %v1328_v2 = vpack.c.bf16 %v1326_v37, %v1324_v0 }
 0x2f6   :  { %v1327_v39 = vsel %vm1318_vm7, %v1313_v60, %v1323_v62 }
 0x2f7   :  { %v1329_v1 = vpack.c.bf16 %v1327_v39, %v1325_v63 }
 0x2f9   :  { %1497 = vmatprep.mubr.bf16.mxu1 %v1329_v1 }
 0x2fa   :  { %1498 = vmatmul.mubr.bf16.vlgmr.msra.gmra.mxu1 %v1328_v2 }
 0x3ba   :  { %v1727_v3 = vpop.f32.mrf.mxu1 }
 0x3bc   :  { %v1728_v5 = vpop.f32.mrf.mxu1 }
 0x3bd   :  { %v1729_v6 = vadd.f32 %v1728_v5, %v1727_v3 }
 0x3be   :  { %v1730_v7 = vpop.f32.mrf.mxu1 }
 0x3bf   :  { %v1500_v8 = vadd.f32 %v1729_v6, %v1692_v4 }
 0x3c0   :  { %v1731_v9 = vpop.f32.mrf.mxu1 }
 0x3c1   :  { %v1709_v10 = vmul.f32 -1.442695, %v1500_v8  ;;  %v1732_v11 = vadd.f32 %v1731_v9, %v1730_v7 }
 0x3c3   :  { %1999 = vpow2.f32 %v1709_v10  ;;  %v1503_v12 = vadd.f32 %v1732_v11, %v1692_v4 }
 0x3c5   :  { %v1710_v13 = vmul.f32 -1.442695, %v1503_v12 }
 0x3c7   :  { %2001 = vpow2.f32 %v1710_v13 }
 0x3d0   :  { %v2000_v14 = vpop.eup %1999 }
 0x3d1   :  { %v1512_v15 = vadd.f32 1.0, %v2000_v14 }
 0x3d3   :  { %2003 = vrcp.f32 %v1512_v15 }
 0x3d4   :  { %v2002_v16 = vpop.eup %2001 }
 0x3d5   :  { %v1513_v17 = vadd.f32 1.0, %v2002_v16 }
 0x3d7   :  { %2005 = vrcp.f32 %v1513_v17 }
 0x3e0   :  { %v2004_v18 = vpop.eup %2003 }
 0x3e1   :  { %1518 = vst [vmem:[%s2664_s10] sm:$0xff] %v2004_v18 }
 0x3e4   :  { %v2006_v19 = vpop.eup %2005 }
 0x3e5   :  { %1519 = vst [vmem:[%s2664_s10 + $0x8] sm:$0xff] %v2006_v19 }
 0x3e6   :  { %1524 = vsyncpa [#allocation3], 1 }

</bundles_post_ra>
